<compile_context>
chip_gen: v6e
topology: v6e:2x2x1
jax: 0.10.0
libtpu: 0.0.40
codegen_flags: <defaults>
</compile_context>

<pallas_src>
import functools

import numpy as np
import jax
import jax.numpy as jnp
from jax import lax
from jax.experimental import pallas as pl
from jax.experimental.pallas import tpu as pltpu

MAX_OBJ = 3      # self.object_num in the PyTorch module
N_PARAM = 5      # per-box params: x, y, 1/w, 1/h, log-normalizer


def _detect_map_kernel(params_ref, cv_ref, coords_ref, r_ref, rt_ref, out_ref,
                       *, CLS, H, W):
    """Single invocation.
    params_ref: f32[NB_PAD, 5]   per-box (x, y, 1/w, 1/h, log_norm)
    cv_ref:     f32[CLS, NB_PAD] class/validity indicator (invalid boxes -> 0 col)
    coords_ref: f32[2, H*W]      flattened pixel coords (row i, col j)
    r_ref:      f32[H*W, W]      R[p, q] = 1 iff p % W == q
    rt_ref:     f32[W, H*W]      R transposed
    out_ref:    f32[CLS, H*W]    batch-0 result slab (lane-dense)
    """
    HW = H * W
    inv_hw = 1.0 / float(HW)

    x = params_ref[:, 0:1]          # (NB, 1)
    y = params_ref[:, 1:2]
    iw = params_ref[:, 2:3]         # 1 / w
    ih = params_ref[:, 3:4]         # 1 / h
    ln = params_ref[:, 4:5]         # -0.5 * log((2*pi)^2 * w * h)

    fi = coords_ref[0:1, :]         # (1, HW) image row index i of flattened pixel
    fj = coords_ref[1:2, :]         # (1, HW) image col index j

    # ---- Stage 1: lane-dense Gaussian densities, one row per box --------------
    di = fi - x
    dj = fj - y
    pdf = jnp.exp(-0.5 * (di * di * iw + dj * dj * ih) + ln)      # (NB, HW)

    # nn.Softmax(dim=2) == per-column softmax over the H axis for every (box, j).
    # pdf <= 1/(2*pi), so exp() cannot overflow; PyTorch's internal max-subtraction
    # is skipped (differences are at float-rounding level).
    e = jnp.exp(pdf)                                              # (NB, HW)
    # strided per-column reduction + re-broadcast as two small indicator matmuls
    den = jnp.dot(e, r_ref[...], preferred_element_type=jnp.float32)       # (NB, W)
    inv_flat = jnp.dot(pl.reciprocal(den, approx=False), rt_ref[...],
                       preferred_element_type=jnp.float32)                 # (NB, HW)
    dm = e * inv_flat                                             # column softmax

    # ---- collapse the box axis into classes (validity folded into cv) ---------
    z = jnp.dot(cv_ref[...], dm, preferred_element_type=jnp.float32)       # (CLS, HW)

    # classes c > 0 sit on a uniform map (softmax of zeros) before their boxes land
    cls_idx = lax.broadcasted_iota(jnp.int32, (CLS, 1), 0)
    z = z + jnp.where(cls_idx > 0, inv_hw, 0.0)

    # ---- Stage 2: the reference softmaxes the whole tensor once per class ------
    # iteration, so slice c is softmaxed (CLS - c) times. Run CLS lane-dense,
    # class-batched passes; classes whose quota is done are frozen with a mask.
    def softmax_pass(t, zz):
        m = jnp.max(zz, axis=1, keepdims=True)
        ez = jnp.exp(zz - m)
        s = jnp.sum(ez, axis=1, keepdims=True)
        zn = ez * pl.reciprocal(s, approx=False)
        return jnp.where(cls_idx <= t, zn, zz)

    z = lax.fori_loop(0, CLS, softmax_pass, z, unroll=True)
    out_ref[...] = z                                              # lane-dense store


@functools.partial(jax.jit, static_argnums=(0, 1))
def _forward_jit(img_size, class_num, key):
    N, C, H, W = img_size
    HW = H * W
    NB = class_num * MAX_OBJ
    NB_PAD = max(8, ((NB + 7) // 8) * 8)

    # ---- box sampling (device-side replica of random_box / gt bookkeeping) -----
    kc, ku = jax.random.split(key)
    counts = jax.random.randint(kc, (class_num,), 1, MAX_OBJ + 1)      # (CLS,)
    u = jax.random.uniform(ku, (class_num, MAX_OBJ, 4), jnp.float32)

    x = jnp.floor((0.2 + 0.6 * u[..., 0]) * W)                         # int() trunc
    y = jnp.floor((0.2 + 0.6 * u[..., 1]) * H)
    w = jnp.floor((0.4 + 0.4 * u[..., 2]) * jnp.minimum(x, W - x))
    h = jnp.floor((0.4 + 0.4 * u[..., 3]) * jnp.minimum(y, H - y))
    w = jnp.maximum(w, 1.0)   # reference would crash on a zero-variance box
    h = jnp.maximum(h, 1.0)

    valid = jnp.arange(MAX_OBJ)[None, :] < counts[:, None]             # (CLS, MAX_OBJ)

    xf = x.reshape(NB)
    yf = y.reshape(NB)
    wf = w.reshape(NB)
    hf = h.reshape(NB)
    validf = valid.reshape(NB)

    log_norm = -(jnp.log(2.0 * jnp.pi) + 0.5 * (jnp.log(wf) + jnp.log(hf)))
    params = jnp.stack([xf, yf, 1.0 / wf, 1.0 / hf, log_norm], axis=1)  # (NB, 5)

    cls_of_box = jnp.repeat(jnp.arange(class_num), MAX_OBJ)             # (NB,)
    cv = ((jnp.arange(class_num)[:, None] == cls_of_box[None, :])
          & validf[None, :]).astype(jnp.float32)                        # (CLS, NB)

    pad = NB_PAD - NB
    if pad:
        params = jnp.pad(params, ((0, pad), (0, 0)))
        cv = jnp.pad(cv, ((0, 0), (0, pad)))

    # constant index plumbing kept out of the kernel (folded by XLA)
    p = jnp.arange(HW)
    coords = jnp.stack([(p // W).astype(jnp.float32),
                        (p % W).astype(jnp.float32)], axis=0)           # (2, HW)
    col_ind = (p[:, None] % W == jnp.arange(W)[None, :]).astype(jnp.float32)  # (HW, W)
    col_ind_t = col_ind.T                                               # (W, HW)

    # ---- Pallas kernel: batch-0 (CLS, H*W) slab ---------------------------------
    kernel = functools.partial(_detect_map_kernel, CLS=class_num, H=H, W=W)
    z0 = pl.pallas_call(
        kernel,
        out_shape=jax.ShapeDtypeStruct((class_num, HW), jnp.float32),
        grid=(1,),
        in_specs=[
            pl.BlockSpec((NB_PAD, N_PARAM), lambda i: (0, 0)),
            pl.BlockSpec((class_num, NB_PAD), lambda i: (0, 0)),
            pl.BlockSpec((2, HW), lambda i: (0, 0)),
            pl.BlockSpec((HW, W), lambda i: (0, 0)),
            pl.BlockSpec((W, HW), lambda i: (0, 0)),
        ],
        out_specs=pl.BlockSpec((class_num, HW), lambda i: (0, 0)),
        compiler_params=pltpu.CompilerParams(dimension_semantics=("arbitrary",)),
    )(params, cv, coords, col_ind, col_ind_t)

    sum0 = z0.reshape(class_num, H, W)[None]                            # (1,CLS,H,W)
    if N > 1:
        # batches n >= 1 never receive a box: softmax of a constant slice is the
        # uniform map and stays uniform under repeated softmax (exact for
        # power-of-two H*W such as 16*16).
        rest = jnp.full((N - 1, class_num, H, W), 1.0 / HW, jnp.float32)
        sum_out = jnp.concatenate([sum0, rest], axis=0)
    else:
        sum_out = sum0

    # ---- gt_boxes / num_boxes (device-side, generation order = (class, j)) -----
    rows = jnp.stack([xf - 0.5 * wf, yf - 0.5 * hf,
                      xf + 0.5 * wf, yf + 0.5 * hf,
                      (cls_of_box + 1).astype(jnp.float32)], axis=1)     # (NB, 5)
    pos = jnp.cumsum(validf.astype(jnp.int32)) - 1
    idx = jnp.where(validf, pos, 30)          # invalid (or >30 overflow) -> dropped
    gt_boxes = jnp.zeros((30, 5), jnp.float32).at[idx].set(rows, mode="drop")[None]
    # TODO(synk): torch.LongTensor is int64; JAX x64 is off by default so int32 is used.
    num_boxes = jnp.sum(counts).reshape(1)

    return sum_out, gt_boxes, num_boxes


def random_detect_map_forward(img_size, class_num=2, key=None):
    if key is None:
        key = jax.random.PRNGKey(0)
    return _forward_jit(tuple(int(v) for v in img_size), int(class_num), key)


if __name__ == "__main__":
    key = jax.random.PRNGKey(0)
    img_size = (2, 4, 16, 16)   # N, C, H, W
    class_num = 2

    sum_map, gt_boxes, num_boxes = random_detect_map_forward(img_size, class_num, key)
    sum_map = jax.block_until_ready(sum_map)
    gt_boxes = jax.block_until_ready(gt_boxes)
    num_boxes = jax.block_until_ready(num_boxes)

    # sanity checks: shapes, each (n, class) map is a softmax distribution,
    # and gt bookkeeping is self-consistent.
    assert sum_map.shape == (img_size[0], class_num, img_size[2], img_size[3])
    assert gt_boxes.shape == (1, 30, 5)
    assert num_boxes.shape == (1,)
    sums = np.asarray(jnp.sum(sum_map, axis=(2, 3)))
    assert np.allclose(sums, 1.0, atol=1e-4), sums
    assert np.isfinite(np.asarray(sum_map)).all()
    nb = int(np.asarray(num_boxes)[0])
    assert class_num <= nb <= class_num * MAX_OBJ, nb
    labels = np.asarray(gt_boxes)[0, :, 4]
    assert int((labels > 0).sum()) == nb

    print("KERNEL_OK")
</pallas_src>

<mosaic_0001>
module attributes {stable_mosaic.version = 11 : i64} {
  func.func @_detect_map_kernel(%arg0: i32, %arg1: memref<8x5xf32, #tpu.memory_space<vmem>>, %arg2: memref<2x8xf32, #tpu.memory_space<vmem>>, %arg3: memref<2x256xf32, #tpu.memory_space<vmem>>, %arg4: memref<256x16xf32, #tpu.memory_space<vmem>>, %arg5: memref<16x256xf32, #tpu.memory_space<vmem>>, %arg6: memref<2x256xf32, #tpu.memory_space<vmem>>) attributes {dimension_semantics = [#tpu.dimension_semantics<arbitrary>], iteration_bounds = array<i64: 1>, scalar_prefetch = 0 : i64, scratch_operands = 0 : i64, tpu.core_type = #tpu.core_type<tc>, window_params = [{pipeline_mode = #tpu.pipeline_mode<synchronous>, transform_indices = @transform_0, window_bounds = array<i64: 8, 5>}, {pipeline_mode = #tpu.pipeline_mode<synchronous>, transform_indices = @transform_1, window_bounds = array<i64: 2, 8>}, {pipeline_mode = #tpu.pipeline_mode<synchronous>, transform_indices = @transform_2, window_bounds = array<i64: 2, 256>}, {pipeline_mode = #tpu.pipeline_mode<synchronous>, transform_indices = @transform_3, window_bounds = array<i64: 256, 16>}, {pipeline_mode = #tpu.pipeline_mode<synchronous>, transform_indices = @transform_4, window_bounds = array<i64: 16, 256>}, {pipeline_mode = #tpu.pipeline_mode<synchronous>, transform_indices = @transform_5, window_bounds = array<i64: 2, 256>}]} {
    %c0 = arith.constant 0 : index
    %c0_0 = arith.constant 0 : index
    %0 = vector.load %arg1[%c0, %c0_0] : memref<8x5xf32, #tpu.memory_space<vmem>>, vector<8x1xf32>
    %c0_1 = arith.constant 0 : index
    %c1 = arith.constant 1 : index
    %1 = vector.load %arg1[%c0_1, %c1] : memref<8x5xf32, #tpu.memory_space<vmem>>, vector<8x1xf32>
    %c0_2 = arith.constant 0 : index
    %c2 = arith.constant 2 : index
    %2 = vector.load %arg1[%c0_2, %c2] : memref<8x5xf32, #tpu.memory_space<vmem>>, vector<8x1xf32>
    %c0_3 = arith.constant 0 : index
    %c3 = arith.constant 3 : index
    %3 = vector.load %arg1[%c0_3, %c3] : memref<8x5xf32, #tpu.memory_space<vmem>>, vector<8x1xf32>
    %c0_4 = arith.constant 0 : index
    %c4 = arith.constant 4 : index
    %4 = vector.load %arg1[%c0_4, %c4] : memref<8x5xf32, #tpu.memory_space<vmem>>, vector<8x1xf32>
    %c0_5 = arith.constant 0 : index
    %c0_6 = arith.constant 0 : index
    %5 = vector.load %arg3[%c0_5, %c0_6] : memref<2x256xf32, #tpu.memory_space<vmem>>, vector<1x256xf32>
    %c1_7 = arith.constant 1 : index
    %c0_8 = arith.constant 0 : index
    %6 = vector.load %arg3[%c1_7, %c0_8] : memref<2x256xf32, #tpu.memory_space<vmem>>, vector<1x256xf32>
    %7 = vector.broadcast %5 : vector<1x256xf32> to vector<8x256xf32>
    %8 = vector.broadcast %0 : vector<8x1xf32> to vector<8x256xf32>
    %9 = arith.subf %7, %8 : vector<8x256xf32>
    %10 = vector.broadcast %6 : vector<1x256xf32> to vector<8x256xf32>
    %11 = vector.broadcast %1 : vector<8x1xf32> to vector<8x256xf32>
    %12 = arith.subf %10, %11 : vector<8x256xf32>
    %13 = arith.mulf %9, %9 : vector<8x256xf32>
    %14 = vector.broadcast %2 : vector<8x1xf32> to vector<8x256xf32>
    %15 = arith.mulf %13, %14 : vector<8x256xf32>
    %16 = arith.mulf %12, %12 : vector<8x256xf32>
    %17 = vector.broadcast %3 : vector<8x1xf32> to vector<8x256xf32>
    %18 = arith.mulf %16, %17 : vector<8x256xf32>
    %19 = arith.addf %15, %18 : vector<8x256xf32>
    %cst = arith.constant -5.000000e-01 : f32
    %20 = vector.broadcast %cst : f32 to vector<8x256xf32>
    %21 = arith.mulf %20, %19 : vector<8x256xf32>
    %22 = vector.broadcast %4 : vector<8x1xf32> to vector<8x256xf32>
    %23 = arith.addf %21, %22 : vector<8x256xf32>
    %24 = math.exp %23 : vector<8x256xf32>
    %25 = math.exp %24 : vector<8x256xf32>
    %c0_9 = arith.constant 0 : index
    %c0_10 = arith.constant 0 : index
    %26 = vector.load %arg4[%c0_9, %c0_10] : memref<256x16xf32, #tpu.memory_space<vmem>>, vector<256x16xf32>
    %cst_11 = arith.constant dense<0.000000e+00> : vector<8x16xf32>
    %27 = tpu.matmul %25, %26, %cst_11 {dimension_numbers = #tpu.dot_dimension_numbers<[1], [0], [0], [1], [0, 0, 1, 1], [], []>} : vector<8x256xf32>, vector<256x16xf32>, vector<8x16xf32> -> vector<8x16xf32>
    %28 = tpu.reciprocal %27 : vector<8x16xf32> -> vector<8x16xf32>
    %c0_12 = arith.constant 0 : index
    %c0_13 = arith.constant 0 : index
    %29 = vector.load %arg5[%c0_12, %c0_13] : memref<16x256xf32, #tpu.memory_space<vmem>>, vector<16x256xf32>
    %cst_14 = arith.constant dense<0.000000e+00> : vector<8x256xf32>
    %30 = tpu.matmul %28, %29, %cst_14 {dimension_numbers = #tpu.dot_dimension_numbers<[1], [0], [0], [1], [0, 0, 1, 1], [], []>} : vector<8x16xf32>, vector<16x256xf32>, vector<8x256xf32> -> vector<8x256xf32>
    %31 = arith.mulf %25, %30 : vector<8x256xf32>
    %c0_15 = arith.constant 0 : index
    %c0_16 = arith.constant 0 : index
    %32 = vector.load %arg2[%c0_15, %c0_16] : memref<2x8xf32, #tpu.memory_space<vmem>>, vector<2x8xf32>
    %cst_17 = arith.constant dense<0.000000e+00> : vector<2x256xf32>
    %33 = tpu.matmul %32, %31, %cst_17 {dimension_numbers = #tpu.dot_dimension_numbers<[1], [0], [0], [1], [0, 0, 1, 1], [], []>} : vector<2x8xf32>, vector<8x256xf32>, vector<2x256xf32> -> vector<2x256xf32>
    %34 = tpu.iota {dimensions = array<i32: 0>} : vector<2x1xi32>
    %c0_i32 = arith.constant 0 : i32
    %35 = vector.broadcast %c0_i32 : i32 to vector<2x1xi32>
    %36 = arith.cmpi sgt, %34, %35 : vector<2x1xi32>
    %cst_18 = arith.constant 3.906250e-03 : f32
    %cst_19 = arith.constant 0.000000e+00 : f32
    %37 = vector.broadcast %cst_18 : f32 to vector<2x1xf32>
    %38 = vector.broadcast %cst_19 : f32 to vector<2x1xf32>
    %39 = arith.select %36, %37, %38 : vector<2x1xi1>, vector<2x1xf32>
    %40 = vector.broadcast %39 : vector<2x1xf32> to vector<2x256xf32>
    %41 = arith.addf %33, %40 : vector<2x256xf32>
    %c0_i32_20 = arith.constant 0 : i32
    %cst_21 = arith.constant dense<0xFF800000> : vector<2xf32>
    %42 = vector.multi_reduction <maximumf>, %41, %cst_21 [1] : vector<2x256xf32> to vector<2xf32>
    %43 = vector.shape_cast %42 : vector<2xf32> to vector<2x1xf32>
    %44 = vector.broadcast %43 : vector<2x1xf32> to vector<2x256xf32>
    %45 = arith.subf %41, %44 : vector<2x256xf32>
    %46 = math.exp %45 : vector<2x256xf32>
    %cst_22 = arith.constant dense<0.000000e+00> : vector<2xf32>
    %47 = vector.multi_reduction <add>, %46, %cst_22 [1] : vector<2x256xf32> to vector<2xf32>
    %48 = vector.shape_cast %47 : vector<2xf32> to vector<2x1xf32>
    %49 = tpu.reciprocal %48 : vector<2x1xf32> -> vector<2x1xf32>
    %50 = vector.broadcast %49 : vector<2x1xf32> to vector<2x256xf32>
    %51 = arith.mulf %46, %50 : vector<2x256xf32>
    %52 = vector.broadcast %c0_i32_20 : i32 to vector<2x1xi32>
    %53 = arith.cmpi sle, %34, %52 : vector<2x1xi32>
    %54 = vector.shape_cast %53 : vector<2x1xi1> to vector<2x1xi1>
    %55 = vector.broadcast %54 : vector<2x1xi1> to vector<2x256xi1>
    %56 = arith.select %55, %51, %41 : vector<2x256xi1>, vector<2x256xf32>
    %c1_i32 = arith.constant 1 : i32
    %cst_23 = arith.constant dense<0xFF800000> : vector<2xf32>
    %57 = vector.multi_reduction <maximumf>, %56, %cst_23 [1] : vector<2x256xf32> to vector<2xf32>
    %58 = vector.shape_cast %57 : vector<2xf32> to vector<2x1xf32>
    %59 = vector.broadcast %58 : vector<2x1xf32> to vector<2x256xf32>
    %60 = arith.subf %56, %59 : vector<2x256xf32>
    %61 = math.exp %60 : vector<2x256xf32>
    %cst_24 = arith.constant dense<0.000000e+00> : vector<2xf32>
    %62 = vector.multi_reduction <add>, %61, %cst_24 [1] : vector<2x256xf32> to vector<2xf32>
    %63 = vector.shape_cast %62 : vector<2xf32> to vector<2x1xf32>
    %64 = tpu.reciprocal %63 : vector<2x1xf32> -> vector<2x1xf32>
    %65 = vector.broadcast %64 : vector<2x1xf32> to vector<2x256xf32>
    %66 = arith.mulf %61, %65 : vector<2x256xf32>
    %67 = vector.broadcast %c1_i32 : i32 to vector<2x1xi32>
    %68 = arith.cmpi sle, %34, %67 : vector<2x1xi32>
    %69 = vector.shape_cast %68 : vector<2x1xi1> to vector<2x1xi1>
    %70 = vector.broadcast %69 : vector<2x1xi1> to vector<2x256xi1>
    %71 = arith.select %70, %66, %56 : vector<2x256xi1>, vector<2x256xf32>
    %c2_i32 = arith.constant 2 : i32
    %c0_25 = arith.constant 0 : index
    %c0_26 = arith.constant 0 : index
    %72 = vector.load %arg6[%c0_25, %c0_26] : memref<2x256xf32, #tpu.memory_space<vmem>>, vector<2x256xf32>
    tpu.vector_store %arg6[%c0_25, %c0_26], %71 {strides = array<i32>} : memref<2x256xf32, #tpu.memory_space<vmem>>, vector<2x256xf32>,
    return
  }
  func.func @transform_0(%arg0: i32) -> (i32, i32) {
    %c0_i32 = arith.constant 0 : i32
    %c0_i32_0 = arith.constant 0 : i32
    %c0_i32_1 = arith.constant 0 : i32
    return %c0_i32, %c0_i32_0 : i32, i32
  }
  func.func @transform_1(%arg0: i32) -> (i32, i32) {
    %c0_i32 = arith.constant 0 : i32
    %c0_i32_0 = arith.constant 0 : i32
    %c0_i32_1 = arith.constant 0 : i32
    return %c0_i32, %c0_i32_0 : i32, i32
  }
  func.func @transform_2(%arg0: i32) -> (i32, i32) {
    %c0_i32 = arith.constant 0 : i32
    %c0_i32_0 = arith.constant 0 : i32
    %c0_i32_1 = arith.constant 0 : i32
    return %c0_i32, %c0_i32_0 : i32, i32
  }
  func.func @transform_3(%arg0: i32) -> (i32, i32) {
    %c0_i32 = arith.constant 0 : i32
    %c0_i32_0 = arith.constant 0 : i32
    %c0_i32_1 = arith.constant 0 : i32
    return %c0_i32, %c0_i32_0 : i32, i32
  }
  func.func @transform_4(%arg0: i32) -> (i32, i32) {
    %c0_i32 = arith.constant 0 : i32
    %c0_i32_0 = arith.constant 0 : i32
    %c0_i32_1 = arith.constant 0 : i32
    return %c0_i32, %c0_i32_0 : i32, i32
  }
  func.func @transform_5(%arg0: i32) -> (i32, i32) {
    %c0_i32 = arith.constant 0 : i32
    %c0_i32_0 = arith.constant 0 : i32
    %c0_i32_1 = arith.constant 0 : i32
    return %c0_i32, %c0_i32_0 : i32, i32
  }
}

</mosaic_0001>

<bundles_post_ra>
// kernel: eq.22
= control target key start
LH: loop header
LB: loop body
LE: loop exit
PB: predicated region body
PF: predicated region fallthrough
CT: control target
= control target key end

     0   :  { %vm8_vm0 = vcmask 23552   ;;  %vm14_vm1 = vcmask 48152   ;;  %s42_s0 = inlined_call_operand.vmem [shape: s32[2,3], index: 0, kind: input, shape index: {}]   ;;  %s43_s1 = inlined_call_operand.vmem [shape: s32[6], index: 1, kind: output, shape index: {}]  }
   0x1   :  { %v5_v0 = vld [vmem:[%s42_s0] sm:$0x3]  ;;  %s25_s0 = smov 3  }
   0x2   :  { %6 = vst [vmem:[#allocation1] sm:$0x3] %v5_v0 }
   0x9   :  { %v11_v1 = vld [vmem:[#allocation1 + $0x1] sm:$0x1]   ;;  %v7_v2 = vld [vmem:[#allocation1] sm:$0x1]  }
   0xa   :  { %12 = vrot.lane.b32.xlu0 %v11_v1, %s25_s0  ;;  %9 = vst.msk [vmem:[#allocation0] sm:$0x1] %vm8_vm0, %v7_v2  }
  0x7c   :  { %v13_v3 = vpop.permute.xlu0 %12  }
  0x7d   :  { %15 = vst.msk [vmem:[#allocation0] sm:$0x1] %vm14_vm1, %v13_v3  }
  0x84   :  { %v20_v4 = vld [vmem:[#allocation0] sm:$0x1] }
  0x85   :  { %23 = vst [vmem:[%s43_s1] sm:$0x1] %v20_v4 }

// kernel: _forward_jit.21
= control target key start
LH: loop header
LB: loop body
LE: loop exit
PB: predicated region body
PF: predicated region fallthrough
CT: control target
= control target key end

     0   :  { %v495_v0 = vmov 0   ;;  %v496_v2 = vmov 2   ;;  %v497_v3 = vmov 1   ;;  %v498_v4 = vmov 3   ;;  %s669_s0 = inlined_call_operand.vmem [shape: f32[8,5], index: 0, kind: input, shape index: {}]   ;;  %s670_s3 = inlined_call_operand.vmem [shape: f32[256,16], index: 3, kind: input, shape index: {}]   ;;  %s671_s2 = inlined_call_operand.vmem [shape: f32[2,256], index: 2, kind: input, shape index: {}]   ;;  %s672_s4 = inlined_call_operand.vmem [shape: f32[16,256], index: 4, kind: input, shape index: {}]   ;;  %s673_s1 = inlined_call_operand.vmem [shape: f32[2,8], index: 1, kind: input, shape index: {}]   ;;  %s674_s5 = inlined_call_operand.vmem [shape: f32[2,256], index: 5, kind: output, shape index: {}]  }
   0x1   :  { %467 = vset.pattern.permute.xlu0 %v495_v0  ;;  %v20_v1 = vld [vmem:[%s669_s0] sm:$0xff]  ;;  %469 = vset.pattern.permute.xlu1 %v496_v2  ;;  %v499_v5 = vmov 4   ;;  %v124_v6 = vld [vmem:[%s670_s3 + $0xf8] sm:$0xff]  ;;  %v123_v8 = vld [vmem:[%s670_s3 + $0xf0] sm:$0xff]  ;;  %v25_v38 = vlaneseq  ;;  %vm200_vm0 = vcmask 130048   ;;  %vm282_vm1 = vcmask 64512  }
   0x2   :  { %37 = vperm.xlu0 %467, %v20_v1   ;;  %62 = vperm.xlu1 %469, %v20_v1   ;;  %v108_v7 = vld [vmem:[%s670_s3 + $0x78] sm:$0xff]  ;;  %v107_v9 = vld [vmem:[%s670_s3 + $0x70] sm:$0xff]  ;;  %v122_v10 = vld [vmem:[%s670_s3 + $0xe8] sm:$0xff]  ;;  %vm357_vm3 = vcmask 1041408  }
   0x3   :  { %426 = vmatprep.subr.mxu0 %v124_v6  ;;  %v106_v11 = vld [vmem:[%s670_s3 + $0x68] sm:$0xff]  ;;  %v121_v12 = vld [vmem:[%s670_s3 + $0xe0] sm:$0xff]  ;;  %v120_v14 = vld [vmem:[%s670_s3 + $0xd8] sm:$0xff]  ;;  %v630_v39 = vshrl.u32 %v25_v38, 7 }
   0x4   :  { %427 = vmatpush3.msra.mxu0 %v108_v7  ;;  %v105_v13 = vld [vmem:[%s670_s3 + $0x60] sm:$0xff]  ;;  %v104_v15 = vld [vmem:[%s670_s3 + $0x58] sm:$0xff]  ;;  %v119_v16 = vld [vmem:[%s670_s3 + $0xd0] sm:$0xff] }
   0x5   :  { %428 = vmatprep.subr.mxu0 %v123_v8  ;;  %v103_v17 = vld [vmem:[%s670_s3 + $0x50] sm:$0xff]  ;;  %v118_v18 = vld [vmem:[%s670_s3 + $0xc8] sm:$0xff]  ;;  %v117_v20 = vld [vmem:[%s670_s3 + $0xc0] sm:$0xff]  ;;  %v27_v40 = vsub.s32 0, %v630_v39  ;;  %v31_v41 = vsub.s32 1, %v630_v39  ;;  %vm280_vm2 = vcmp.gt.s32.totalorder %v630_v39, 0 }
   0x6   :  { %468 = vset.pattern.permute.xlu0 %v497_v3  ;;  %470 = vset.pattern.permute.xlu1 %v498_v4  ;;  %v102_v19 = vld [vmem:[%s670_s3 + $0x48] sm:$0xff]  ;;  %v101_v21 = vld [vmem:[%s670_s3 + $0x40] sm:$0xff]  ;;  %v116_v22 = vld [vmem:[%s670_s3 + $0xb8] sm:$0xff]  ;;  %vm377_vm4 = vcmp.le.s32.totalorder %v630_v39, 0  ;;  %vm401_vm5 = vcmp.le.s32.totalorder %v630_v39, 1 }
   0x7   :  { %54 = vperm.xlu0 %468, %v20_v1   ;;  %70 = vperm.xlu1 %470, %v20_v1   ;;  %v100_v23 = vld [vmem:[%s670_s3 + $0x38] sm:$0xff]  ;;  %v115_v24 = vld [vmem:[%s670_s3 + $0xb0] sm:$0xff]  ;;  %v114_v26 = vld [vmem:[%s670_s3 + $0xa8] sm:$0xff] }
   0x8   :  { %429 = vmatpush3.msra.mxu0 %v107_v9  ;;  %v99_v25 = vld [vmem:[%s670_s3 + $0x30] sm:$0xff]  ;;  %v98_v27 = vld [vmem:[%s670_s3 + $0x28] sm:$0xff]  ;;  %v113_v28 = vld [vmem:[%s670_s3 + $0xa0] sm:$0xff] }
   0x9   :  { %430 = vmatprep.subr.mxu0 %v122_v10  ;;  %v97_v29 = vld [vmem:[%s670_s3 + $0x20] sm:$0xff]  ;;  %v112_v30 = vld [vmem:[%s670_s3 + $0x98] sm:$0xff]  ;;  %v111_v32 = vld [vmem:[%s670_s3 + $0x90] sm:$0xff] }
   0xa   :  { %431 = vmatpush3.msra.mxu0 %v106_v11  ;;  %v96_v31 = vld [vmem:[%s670_s3 + $0x18] sm:$0xff]  ;;  %v95_v33 = vld [vmem:[%s670_s3 + $0x10] sm:$0xff]  ;;  %v110_v34 = vld [vmem:[%s670_s3 + $0x88] sm:$0xff] }
   0xb   :  { %471 = vset.pattern.permute.xlu1 %v499_v5  ;;  %472 = vset.pattern.permute.xlu0 %v499_v5  ;;  %v94_v35 = vld [vmem:[%s670_s3 + $0x8] sm:$0xff]  ;;  %v109_v36 = vld [vmem:[%s670_s3 + $0x80] sm:$0xff] }
   0xc   :  { %80 = vperm.xlu1 %471, %v20_v1   ;;  %432 = vmatprep.subr.mxu0 %v121_v12  ;;  %v93_v37 = vld [vmem:[%s670_s3] sm:$0xff] }
   0xd   :  { %433 = vmatpush3.msra.mxu0 %v105_v13  ;;  %v21_v42 = vld [vmem:[%s671_s2] ss:$2 sm:$0x3]  ;;  %v422_v45 = vld [vmem:[%s671_s2 + $0x1] ss:$2 sm:$0x3] }
   0xe   :  { %434 = vmatprep.subr.mxu0 %v120_v14  ;;  %v28_v43 = vrot.slane %v21_v42, %v27_v40  ;;  %v32_v44 = vrot.slane %v21_v42, %v31_v41  ;;  %v46_v50 = vrot.slane %v422_v45, %v27_v40  ;;  %v50_v51 = vrot.slane %v422_v45, %v31_v41 }
   0xf   :  { %435 = vmatpush3.msra.mxu0 %v104_v15  ;;  %v199_v15 = vld [vmem:[%s672_s4 + $0x18] sm:$0xff] }
  0x10   :  { %436 = vmatprep.subr.mxu0 %v119_v16  ;;  %v198_v16 = vld [vmem:[%s672_s4 + $0x10] sm:$0xff]  ;;  %232 = vmatprep.subr.mxu1 %v199_v15 }
  0x11   :  { %437 = vmatpush3.msra.mxu0 %v103_v17  ;;  %v197_v17 = vld [vmem:[%s672_s4 + $0x8] sm:$0xff]  ;;  %233 = vmatpush1.msra.mxu1 %v198_v16 }
  0x12   :  { %438 = vmatprep.subr.mxu0 %v118_v18  ;;  %v500_v18 = vmov 0.0   ;;  %234 = vmatprep.subr.mxu1 %v197_v17 }
  0x13   :  { %439 = vmatpush3.msra.mxu0 %v102_v19  ;;  %268 = vmatprep.mubr.f32.mxu1 %v500_v18  ;;  %v196_v19 = vld [vmem:[%s672_s4] sm:$0xff] }
  0x14   :  { %440 = vmatprep.subr.mxu0 %v117_v20  ;;  %235 = vmatpush1.msra.mxu1 %v196_v19 }
  0x15   :  { %441 = vmatpush3.msra.mxu0 %v101_v21 }
  0x16   :  { %442 = vmatprep.subr.mxu0 %v116_v22 }
  0x17   :  { %443 = vmatpush3.msra.mxu0 %v100_v23 }
  0x18   :  { %444 = vmatprep.subr.mxu0 %v115_v24 }
  0x19   :  { %445 = vmatpush3.msra.mxu0 %v99_v25 }
  0x1a   :  { %446 = vmatprep.subr.mxu0 %v114_v26 }
  0x1b   :  { %447 = vmatpush3.msra.mxu0 %v98_v27 }
  0x1c   :  { %448 = vmatprep.subr.mxu0 %v113_v28  ;;  %v277_v28 = vld [vmem:[%s673_s1] sm:$0x3] }
  0x1d   :  { %449 = vmatpush3.msra.mxu0 %v97_v29  ;;  %v281_v29 = vsel %vm280_vm2, 0.00390625, %v500_v18 }
  0x1e   :  { %450 = vmatprep.subr.mxu0 %v112_v30 }
  0x1f   :  { %451 = vmatpush3.msra.mxu0 %v96_v31 }
  0x20   :  { %452 = vmatprep.subr.mxu0 %v111_v32 }
  0x21   :  { %453 = vmatpush3.msra.mxu0 %v95_v33 }
  0x22   :  { %454 = vmatprep.subr.mxu0 %v110_v34 }
  0x23   :  { %455 = vmatpush3.msra.mxu0 %v94_v35 }
  0x24   :  { %456 = vmatprep.subr.mxu0 %v109_v36 }
  0x25   :  { %457 = vmatpush3.msra.mxu0 %v93_v37 }
  0x7d   :  { %v38_v46 = vpop.permute.xlu0 %37  ;;  %v63_v47 = vpop.permute.xlu1 %62 }
  0x7e   :  { %v40_v48 = vsub.f32 %v28_v43, %v38_v46  ;;  %v41_v49 = vsub.f32 %v32_v44, %v38_v46 }
  0x80   :  { %v59_v53 = vmul.f32 %v40_v48, %v40_v48  ;;  %v60_v54 = vmul.f32 %v41_v49, %v41_v49 }
  0x82   :  { %v55_v52 = vpop.permute.xlu0 %54  ;;  %v71_v57 = vpop.permute.xlu1 %70  ;;  %v65_v60 = vmul.f32 %v63_v47, %v59_v53  ;;  %v66_v61 = vmul.f32 %v63_v47, %v60_v54 }
  0x83   :  { %v57_v55 = vsub.f32 %v46_v50, %v55_v52  ;;  %v58_v56 = vsub.f32 %v50_v51, %v55_v52 }
  0x85   :  { %v67_v58 = vmul.f32 %v57_v55, %v57_v55  ;;  %v68_v59 = vmul.f32 %v58_v56, %v58_v56 }
  0x87   :  { %v73_v62 = vmul.f32 %v71_v57, %v67_v58  ;;  %v74_v63 = vmul.f32 %v71_v57, %v68_v59  ;;  %v81_v2 = vpop.permute.xlu1 %80 }
  0x89   :  { %v75_v0 = vadd.f32 %v73_v62, %v65_v60  ;;  %v76_v1 = vadd.f32 %v74_v63, %v66_v61 }
  0x8b   :  { %v77_v3 = vmul.f32 -0.5, %v75_v0  ;;  %v78_v4 = vmul.f32 -0.5, %v76_v1 }
  0x8d   :  { %v83_v5 = vadd.f32 %v81_v2, %v77_v3  ;;  %v84_v6 = vadd.f32 %v81_v2, %v78_v4 }
  0x8f   :  { %v85_v7 = vmul.f32 1.442695, %v83_v5  ;;  %v87_v8 = vmul.f32 1.442695, %v84_v6 }
  0x91   :  { %473 = vpow2.f32 %v85_v7 }
  0x92   :  { %475 = vpow2.f32 %v87_v8 }
  0x9e   :  { %v474_v9 = vpop.eup %473 }
  0x9f   :  { %v476_v10 = vpop.eup %475  ;;  %v89_v11 = vmul.f32 1.442695, %v474_v9 }
  0xa0   :  { %v91_v12 = vmul.f32 1.442695, %v476_v10 }
  0xa1   :  { %477 = vpow2.f32 %v89_v11 }
  0xa2   :  { %479 = vpow2.f32 %v91_v12 }
  0xae   :  { %v478_v13 = vpop.eup %477 }
  0xaf   :  { %v480_v14 = vpop.eup %479 }
  0xb0   :  { %189 = vmatprep.mubr.f32.mxu0 %v480_v14 }
  0xb1   :  { %190 = vmatmul.mubr.f32.vlgmr.msra.gmra.mxu0 %v478_v13 }
 0x171   :  { %v458_v20 = vpop.f32.mrf.mxu0 }
 0x173   :  { %v459_v21 = vpop.f32.mrf.mxu0 }
 0x174   :  { %v460_v22 = vadd.f32 %v459_v21, %v458_v20 }
 0x176   :  { %481 = vrcp.f32 %v460_v22 }
 0x183   :  { %v482_v23 = vpop.eup %481 }
 0x184   :  { %423 = vmatmul.mubr.msk.f32.vlgmr.msra.gmra.mxu1 %vm200_vm0, %v482_v23 }
 0x185   :  { %350 = vmatprep.mubr.f32.mxu1 %v500_v18 }
 0x244   :  { %v270_v24 = vpop.f32.mrf.mxu1 }
 0x245   :  { %v275_v27 = vmul.f32 %v478_v13, %v270_v24 }
 0x246   :  { %v272_v25 = vpop.f32.mrf.mxu1 }
 0x247   :  { %v276_v26 = vmul.f32 %v480_v14, %v272_v25 }
 0x249   :  { %316 = vmatprep.subr.mxu1 %v276_v26 }
 0x24a   :  { %317 = vmatpush1.msra.mxu1 %v275_v27 }
 0x24b   :  { %424 = vmatmul.mubr.msk.f32.vlgmr.msra.gmra.mxu1 %vm282_vm1, %v277_v28 }
 0x30b   :  { %v352_v30 = vpop.f32.mrf.mxu1 }
 0x30c   :  { %v353_v31 = vadd.f32 %v352_v30, %v281_v29 }
 0x30d   :  { %v354_v32 = vpop.f32.mrf.mxu1 }
 0x30e   :  { %v355_v33 = vadd.f32 %v354_v32, %v281_v29  ;;  %v358_v34 = vsel %vm357_vm3, %v353_v31, -inf }
 0x310   :  { %v359_v35 = vsel %vm357_vm3, %v355_v33, -inf }
 0x311   :  { %v360_v36 = vmax.f32 %v358_v34, %v359_v35 }
 0x313   :  { %361 = vmax.xlane.f32.xlu0 %v360_v36 }
 0x39c   :  { %v362_v37 = vpop.xlane.xlu0 %361 }
 0x39d   :  { %v363_v38 = vsub.f32 %v353_v31, %v362_v37  ;;  %v364_v40 = vsub.f32 %v355_v33, %v362_v37 }
 0x39f   :  { %v365_v41 = vmul.f32 1.442695, %v363_v38  ;;  %v367_v42 = vmul.f32 1.442695, %v364_v40 }
 0x3a1   :  { %483 = vpow2.f32 %v365_v41 }
 0x3a2   :  { %485 = vpow2.f32 %v367_v42 }
 0x3ae   :  { %v484_v43 = vpop.eup %483 }
 0x3af   :  { %v486_v44 = vpop.eup %485  ;;  %v369_v45 = vsel %vm357_vm3, %v484_v43, 0.0 }
 0x3b0   :  { %v370_v46 = vsel %vm357_vm3, %v486_v44, 0.0 }
 0x3b1   :  { %v371_v47 = vadd.f32 %v370_v46, %v369_v45 }
 0x3b3   :  { %372 = vadd.xlane.f32.xlu1 %v371_v47 }
 0x43c   :  { %v373_v48 = vpop.xlane.xlu1 %372 }
 0x43d   :  { %487 = vrcp.f32 %v373_v48 }
 0x44a   :  { %v488_v49 = vpop.eup %487 }
 0x44b   :  { %v375_v50 = vmul.f32 %v488_v49, %v484_v43  ;;  %v376_v51 = vmul.f32 %v488_v49, %v486_v44 }
 0x44d   :  { %v380_v52 = vsel %vm377_vm4, %v375_v50, %v353_v31  ;;  %v381_v53 = vsel %vm377_vm4, %v376_v51, %v355_v33 }
 0x44e   :  { %v382_v54 = vsel %vm357_vm3, %v380_v52, -inf  ;;  %v383_v55 = vsel %vm357_vm3, %v381_v53, -inf }
 0x44f   :  { %v384_v56 = vmax.f32 %v382_v54, %v383_v55 }
 0x451   :  { %385 = vmax.xlane.f32.xlu0 %v384_v56 }
 0x4da   :  { %v386_v57 = vpop.xlane.xlu0 %385 }
 0x4db   :  { %v387_v58 = vsub.f32 %v380_v52, %v386_v57  ;;  %v388_v59 = vsub.f32 %v381_v53, %v386_v57 }
 0x4dd   :  { %v389_v60 = vmul.f32 1.442695, %v387_v58  ;;  %v391_v61 = vmul.f32 1.442695, %v388_v59 }
 0x4df   :  { %489 = vpow2.f32 %v389_v60 }
 0x4e0   :  { %491 = vpow2.f32 %v391_v61 }
 0x4ec   :  { %v490_v62 = vpop.eup %489 }
 0x4ed   :  { %v492_v63 = vpop.eup %491  ;;  %v393_v0 = vsel %vm357_vm3, %v490_v62, 0.0 }
 0x4ee   :  { %v394_v1 = vsel %vm357_vm3, %v492_v63, 0.0 }
 0x4ef   :  { %v395_v2 = vadd.f32 %v394_v1, %v393_v0 }
 0x4f1   :  { %396 = vadd.xlane.f32.xlu0 %v395_v2 }
 0x57a   :  { %v397_v3 = vpop.xlane.xlu0 %396 }
 0x57b   :  { %493 = vrcp.f32 %v397_v3 }
 0x588   :  { %v494_v4 = vpop.eup %493 }
 0x589   :  { %v399_v5 = vmul.f32 %v494_v4, %v490_v62  ;;  %v400_v6 = vmul.f32 %v494_v4, %v492_v63 }
 0x58b   :  { %v404_v7 = vsel %vm401_vm5, %v399_v5, %v380_v52  ;;  %v405_v8 = vsel %vm401_vm5, %v400_v6, %v381_v53 }
 0x58c   :  { %v408_v9 = vcombine.low %v404_v7, %v405_v8 }
 0x58e   :  { %425 = vst.sshfl [vmem:[%s674_s5] sm:$0x33 pattern:$0x76325410] %v408_v9 }

</bundles_post_ra>
